<compile_context>
chip_gen: v7x
topology: tpu7x:2x2x1
jax: 0.10.0
libtpu: 0.0.40
codegen_flags: <defaults>
</compile_context>

<pallas_src>
import functools

import jax
import jax.numpy as jnp
from jax.experimental import pallas as pl
from jax.experimental.pallas import tpu as pltpu


# ---------------------------------------------------------------------------
# Best-effort hardware queries (conservative fallbacks everywhere).
# ---------------------------------------------------------------------------

def _vmem_budgets():
    """(tile-sizing budget, compiler vmem limit) in bytes; headroom applied once."""
    try:
        cap = int(pltpu.get_tpu_info().vmem_capacity_bytes)
    except Exception:
        cap = 64 * 1024 * 1024            # conservative fallback (v7x physical VMEM)
    budget = min(int(cap * 0.70), 96 * 1024 * 1024)   # used to size tiles
    limit = min(int(cap * 0.85), 100 * 1024 * 1024)   # handed to the compiler
    return budget, limit


def _num_tensorcores():
    """TensorCores per chip: 2 on v7x, 1 on v5e/v6e (and unknown/interpret)."""
    try:
        kind = jax.devices()[0].device_kind.lower()
    except Exception:
        return 1
    return 2 if "v7" in kind else 1


def _native_bf16_compute_ok():
    """True where the VPU/EUP have a native bf16 path (v6e/v7x, CPU interpret)."""
    try:
        kind = jax.devices()[0].device_kind.lower()
    except Exception:
        return False
    return not any(v in kind for v in ("v2", "v3", "v4", "v5"))


# ---------------------------------------------------------------------------
# Kernels
# ---------------------------------------------------------------------------

def _softmax_resident_kernel(x_ref, o_ref, *, compute_dtype):
    """Softmax over dim 0 with the full reduction dim resident in the block."""
    e = jnp.exp(x_ref[...].astype(compute_dtype))                 # EUP
    # Stage exp(x) through the output window so the full-tile intermediate is
    # not kept live (vregs / spill VMEM) across the cross-sublane reduction.
    o_ref[...] = e.astype(o_ref.dtype)
    denom = jnp.sum(o_ref[...].astype(jnp.float32), axis=0, keepdims=True)
    inv = (1.0 / denom).astype(compute_dtype)                     # exact, (1, tile_n) only
    o_ref[...] = (o_ref[...].astype(compute_dtype) * inv).astype(o_ref.dtype)


def _exp_colsum_kernel(x_ref, denom_ref, *, compute_dtype, d0, block_d0):
    """Pass 1 of the large-d0 path: accumulate sum(exp(x)) over dim-0 blocks."""
    k = pl.program_id(1)                  # reduction axis is the last grid axis

    @pl.when(k == 0)
    def _init():
        denom_ref[...] = jnp.zeros_like(denom_ref)

    e = jnp.exp(x_ref[...].astype(compute_dtype)).astype(jnp.float32)
    if d0 % block_d0 != 0:                # ragged last d0 block: mask pad rows
        rows = k * block_d0 + jax.lax.broadcasted_iota(jnp.int32, e.shape, 0)
        e = jnp.where(rows < d0, e, 0.0)
    denom_ref[...] += jnp.sum(e, axis=0, keepdims=True)


def _exp_scale_kernel(denom_ref, x_ref, o_ref, *, compute_dtype):
    """Pass 2 of the large-d0 path: recompute exp(x) and scale by 1/denom."""
    inv = (1.0 / denom_ref[...]).astype(compute_dtype)            # (1, tile_n)
    e = jnp.exp(x_ref[...].astype(compute_dtype))
    o_ref[...] = (e * inv).astype(o_ref.dtype)


def _softmax_flat_kernel(x_ref, o_ref, *, compute_dtype):
    """1-D input re-laid out lane-major as (rows, 128); reduce over everything."""
    e = jnp.exp(x_ref[...].astype(compute_dtype))
    e32 = e.astype(jnp.float32)
    denom = jnp.sum(jnp.sum(e32, axis=1, keepdims=True), axis=0, keepdims=True)
    inv = (1.0 / denom).astype(compute_dtype)
    o_ref[...] = (e * inv).astype(o_ref.dtype)


# ---------------------------------------------------------------------------
# Wrappers
# ---------------------------------------------------------------------------

def _softmax_flat(x, compute_dtype, vmem_limit):
    n = x.shape[0]
    n_pad = pl.cdiv(n, 128) * 128
    pad = n_pad - n
    if pad:
        # exp(-inf) == 0 exactly, so the padding never touches the denominator.
        x = jnp.concatenate([x, jnp.full((pad,), -jnp.inf, dtype=x.dtype)])
    x2 = x.reshape(n_pad // 128, 128)
    out2 = pl.pallas_call(
        functools.partial(_softmax_flat_kernel, compute_dtype=compute_dtype),
        out_shape=jax.ShapeDtypeStruct(x2.shape, x2.dtype),
        compiler_params=pltpu.CompilerParams(vmem_limit_bytes=vmem_limit),
    )(x2)
    # TODO(synk): tile the 1-D path across a grid for very long vectors.
    return out2.reshape(-1)[:n]


def _softmax_two_pass(x2, compute_dtype, budget, vmem_limit, block_rows=None):
    """Large-d0 path: per-column exp-sum accumulation, then recompute + scale."""
    d0, d1 = x2.shape
    itemsize = jnp.dtype(x2.dtype).itemsize
    d1_padded = pl.cdiv(d1, 128) * 128
    tile_n = min(d1_padded, 1024)                     # lane-dense regardless of d0
    # Rows per block: 2x double-buffered in + out windows plus ~one f32 temp.
    per_row = tile_n * (4 * itemsize + 4)
    td0 = (budget // max(per_row, 1)) // 8 * 8
    td0 = int(max(8, min(td0, pl.cdiv(d0, 8) * 8, 2048)))
    if block_rows is not None:                        # test hook
        td0 = int(max(8, (int(block_rows) // 8) * 8))
    n_j = pl.cdiv(d1, tile_n)
    n_k = pl.cdiv(d0, td0)

    denom = pl.pallas_call(
        functools.partial(_exp_colsum_kernel, compute_dtype=compute_dtype,
                          d0=d0, block_d0=td0),
        out_shape=jax.ShapeDtypeStruct((1, d1), jnp.float32),
        grid_spec=pl.GridSpec(
            grid=(n_j, n_k),
            in_specs=[pl.BlockSpec((td0, tile_n), lambda j, k: (k, j))],
            out_specs=pl.BlockSpec((1, tile_n), lambda j, k: (0, j)),
        ),
        compiler_params=pltpu.CompilerParams(
            dimension_semantics=("parallel", "arbitrary"),
            vmem_limit_bytes=vmem_limit),
    )(x2)

    return pl.pallas_call(
        functools.partial(_exp_scale_kernel, compute_dtype=compute_dtype),
        out_shape=jax.ShapeDtypeStruct((d0, d1), x2.dtype),
        grid_spec=pl.GridSpec(
            grid=(n_j, n_k),
            in_specs=[pl.BlockSpec((1, tile_n), lambda j, k: (0, j)),
                      pl.BlockSpec((td0, tile_n), lambda j, k: (k, j))],
            out_specs=pl.BlockSpec((td0, tile_n), lambda j, k: (k, j)),
        ),
        compiler_params=pltpu.CompilerParams(
            dimension_semantics=("parallel", "arbitrary"),
            vmem_limit_bytes=vmem_limit),
    )(denom, x2)


def softmax_dim0(x, *, force_two_pass=False, two_pass_block_rows=None):
    """Pallas equivalent of: torch.exp(x) / torch.exp(x).sum(dim=0)."""
    budget, vmem_limit = _vmem_budgets()
    compute_dtype = (jnp.bfloat16
                     if (x.dtype == jnp.bfloat16 and _native_bf16_compute_ok())
                     else jnp.float32)

    if x.ndim == 1:
        return _softmax_flat(x, compute_dtype, vmem_limit)

    orig_shape = x.shape
    x2 = x if x.ndim == 2 else x.reshape(x.shape[0], -1)
    d0, d1 = x2.shape
    itemsize = jnp.dtype(x2.dtype).itemsize
    d1_padded = pl.cdiv(d1, 128) * 128

    # Largest lane tile for which a full-d0-resident block (2x double-buffered
    # in + out windows plus ~one f32 temp) fits the single-headroom budget.
    per_lane = d0 * (4 * itemsize + 4)
    vmem_tile = (budget // max(per_lane, 1)) // 128 * 128
    resident_ok = (not force_two_pass) and vmem_tile >= min(d1_padded, 512)

    if resident_ok:
        tile_n = min(d1_padded, vmem_tile)
        n_cores = _num_tensorcores()
        if n_cores >= 2 and d1_padded >= 2 * n_cores * 128:
            # Only chips with >1 TensorCore gain from shorter tiles: give each
            # core >= 2 blocks so the "parallel" axis load-balances (v7x).
            per_core = pl.cdiv(pl.cdiv(d1_padded, 2 * n_cores), 128) * 128
            tile_n = min(tile_n, max(per_core, 128))
        out = pl.pallas_call(
            functools.partial(_softmax_resident_kernel, compute_dtype=compute_dtype),
            out_shape=jax.ShapeDtypeStruct((d0, d1), x2.dtype),
            grid_spec=pl.GridSpec(
                grid=(pl.cdiv(d1, tile_n),),
                in_specs=[pl.BlockSpec((d0, tile_n), lambda j: (0, j))],
                out_specs=pl.BlockSpec((d0, tile_n), lambda j: (0, j)),
            ),
            compiler_params=pltpu.CompilerParams(
                dimension_semantics=("parallel",),
                vmem_limit_bytes=vmem_limit),
        )(x2)
    else:
        out = _softmax_two_pass(x2, compute_dtype, budget, vmem_limit,
                                block_rows=two_pass_block_rows)

    return out.reshape(orig_shape)


def softmax_dim0_ref(x):
    e = jnp.exp(x)
    return e / jnp.sum(e, axis=0, keepdims=True)


if __name__ == "__main__":
    key = jax.random.PRNGKey(0)
    k1, k2, k3, k4 = jax.random.split(key, 4)

    # Shape consistent with the module's forward: seq=16, hidden=256 (f32).
    x = jax.random.normal(k1, (16, 256), dtype=jnp.float32)
    out = jax.block_until_ready(softmax_dim0(x))
    ref = softmax_dim0_ref(x)
    assert out.shape == ref.shape and out.dtype == ref.dtype
    assert jnp.allclose(out, ref, atol=1e-4, rtol=1e-4), "f32 resident path mismatch"

    # bf16 path (bf16-native VPU/EUP on v6e/v7x; f32 upcast elsewhere).
    xb = jax.random.normal(k2, (16, 256), dtype=jnp.bfloat16)
    outb = jax.block_until_ready(softmax_dim0(xb))
    refb = softmax_dim0_ref(xb.astype(jnp.float32))
    assert outb.dtype == jnp.bfloat16
    assert jnp.allclose(outb.astype(jnp.float32), refb, atol=2e-2, rtol=2e-2), \
        "bf16 path mismatch"

    # Large-d0 two-pass path, forced at a small shape to exercise the
    # accumulator grid and ragged-d0 masking.
    xt = jax.random.normal(k3, (50, 160), dtype=jnp.float32)
    outt = jax.block_until_ready(
        softmax_dim0(xt, force_two_pass=True, two_pass_block_rows=16))
    reft = softmax_dim0_ref(xt)
    assert jnp.allclose(outt, reft, atol=1e-4, rtol=1e-4), "two-pass path mismatch"

    # 1-D lane-major path (length not a multiple of 128).
    xv = jax.random.normal(k4, (300,), dtype=jnp.float32)
    outv = jax.block_until_ready(softmax_dim0(xv))
    refv = softmax_dim0_ref(xv)
    assert jnp.allclose(outv, refv, atol=1e-4, rtol=1e-4), "1-D path mismatch"

    print("KERNEL_OK")
</pallas_src>

<mosaic_0001>
module attributes {stable_mosaic.version = 11 : i64} {
  func.func @_softmax_resident_kernel(%arg0: i32, %arg1: memref<16x256xf32, #tpu.memory_space<vmem>>, %arg2: memref<16x256xf32, #tpu.memory_space<vmem>>) attributes {dimension_semantics = [#tpu.dimension_semantics<parallel>], iteration_bounds = array<i64: 1>, scalar_prefetch = 0 : i64, scratch_operands = 0 : i64, tpu.core_type = #tpu.core_type<tc>, window_params = [{transform_indices = @transform_0, window_bounds = array<i64: 16, 256>}, {transform_indices = @transform_1, window_bounds = array<i64: 16, 256>}]} {
    %c0 = arith.constant 0 : index
    %c0_0 = arith.constant 0 : index
    %0 = vector.load %arg1[%c0, %c0_0] : memref<16x256xf32, #tpu.memory_space<vmem>>, vector<16x256xf32>
    %1 = math.exp %0 : vector<16x256xf32>
    %c0_1 = arith.constant 0 : index
    %c0_2 = arith.constant 0 : index
    %2 = vector.load %arg2[%c0_1, %c0_2] : memref<16x256xf32, #tpu.memory_space<vmem>>, vector<16x256xf32>
    tpu.vector_store %arg2[%c0_1, %c0_2], %1 {strides = array<i32>} : memref<16x256xf32, #tpu.memory_space<vmem>>, vector<16x256xf32>,
    %c0_3 = arith.constant 0 : index
    %c0_4 = arith.constant 0 : index
    %3 = vector.load %arg2[%c0_3, %c0_4] : memref<16x256xf32, #tpu.memory_space<vmem>>, vector<16x256xf32>
    %cst = arith.constant dense<0.000000e+00> : vector<256xf32>
    %4 = vector.multi_reduction <add>, %3, %cst [0] : vector<16x256xf32> to vector<256xf32>
    %5 = vector.shape_cast %4 : vector<256xf32> to vector<1x256xf32>
    %cst_5 = arith.constant 1.000000e+00 : f32
    %6 = vector.broadcast %cst_5 : f32 to vector<1x256xf32>
    %7 = arith.divf %6, %5 : vector<1x256xf32>
    %c0_6 = arith.constant 0 : index
    %c0_7 = arith.constant 0 : index
    %8 = vector.load %arg2[%c0_6, %c0_7] : memref<16x256xf32, #tpu.memory_space<vmem>>, vector<16x256xf32>
    %9 = vector.broadcast %7 : vector<1x256xf32> to vector<16x256xf32>
    %10 = arith.mulf %8, %9 : vector<16x256xf32>
    %c0_8 = arith.constant 0 : index
    %c0_9 = arith.constant 0 : index
    %11 = vector.load %arg2[%c0_8, %c0_9] : memref<16x256xf32, #tpu.memory_space<vmem>>, vector<16x256xf32>
    tpu.vector_store %arg2[%c0_8, %c0_9], %10 {strides = array<i32>} : memref<16x256xf32, #tpu.memory_space<vmem>>, vector<16x256xf32>,
    return
  }
  func.func @transform_0(%arg0: i32) -> (i32, i32) {
    %c0_i32 = arith.constant 0 : i32
    %c0_i32_0 = arith.constant 0 : i32
    return %c0_i32, %arg0 : i32, i32
  }
  func.func @transform_1(%arg0: i32) -> (i32, i32) {
    %c0_i32 = arith.constant 0 : i32
    %c0_i32_0 = arith.constant 0 : i32
    return %c0_i32, %arg0 : i32, i32
  }
}

</mosaic_0001>

<bundles_post_ra>
// kernel: tpu_custom_call.1
= control target key start
LH: loop header
LB: loop body
LE: loop exit
PB: predicated region body
PF: predicated region fallthrough
CT: control target
= control target key end

     0   :  { %6 = vsyncpa [#allocation3], 0  ;;  %s194_s0 = inlined_call_operand.hbm [shape: f32[16,256], index: 0, kind: input, shape index: {}]   ;;  %s195_s1 = inlined_call_operand.hbm [shape: f32[16,256], index: 1, kind: output, shape index: {}]  }
   0x1   :  { %7 = vsyncpa [#allocation4], 0  ;;  %s150_s6 = smov [#allocation2]   ;;  %s102_s10 = scalar_lea.hbm %s194_s0, 512 }
   0x2   :  { %s13_s7 = sshll.u32 %s150_s6, 4  ;;  %p103_p0 = scmp.ne.s32.totalorder %s194_s0, %s102_s10  ;;  %s14_s7 = int_to_ptr.vmem [resolvable:$true] %s13_s7 }
   0x3   :  { %p106_p1 = scmp.lt.u32.totalorder %s102_s10, %s194_s0 }
   0x5   :  { %p108_p2 = pnand %p106_p1, %p103_p0 }
   0x7   :  { %111 = shalt.err (!%p108_p2)
}
   0x8   :  { %s112_s15 = scalar_lea.vmem %s14_s7, 512  ;;  %p117_p4 = scmp.lt.s32.totalorder %s14_s7, %s14_s7 }
   0x9   :  { %p113_p3 = scmp.ne.s32.totalorder %s14_s7, %s112_s15  ;;  %p118_p5 = scmp.lt.s32.totalorder %s112_s15, %s112_s15 }
   0xb   :  { %p119_p6 = por %p118_p5, %p117_p4 }
   0xd   :  { %p120_p7 = pnand %p119_p6, %p113_p3 }
   0xf   :  { %123 = shalt.err (!%p120_p7)
}
  0x10   :  { %s151_s16 = smov 256   ;;  %s152_s17 = smov 16  }
  0x11   :  { %19 = dma.hbm_to_vmem [thread:$0]  %s194_s0, 512, %s14_s7, [#allocation3], %s151_s16, %s151_s16, %s152_s17  }
  0x12   :  { %146 = dma.done.wait [#allocation3], 512  }
  0x13   :  { %147 = vsyncadd [#allocation3], 4294966784  ;;  %v23_v0 = vld [vmem:[#allocation2] sm:$0xff]  ;;  %v24_v1 = vld [vmem:[#allocation2 + $0x8] sm:$0xff]  ;;  %s153_s0 = smov [#allocation5]  }
  0x14   :  { %v25_v2 = vld [vmem:[#allocation2 + $0x10] sm:$0xff]  ;;  %v27_v3 = vmul.f32 1.442695, %v23_v0  ;;  %v29_v4 = vmul.f32 1.442695, %v24_v1  ;;  %v26_v6 = vld [vmem:[#allocation2 + $0x18] sm:$0xff] }
  0x15   :  { %v31_v5 = vmul.f32 1.442695, %v25_v2  ;;  %v33_v7 = vmul.f32 1.442695, %v26_v6  ;;  %s74_s20 = sshll.u32 %s153_s0, 4  ;;  %s75_s20 = int_to_ptr.vmem [resolvable:$true] %s74_s20 }
  0x16   :  { %90 = vpow2.f32 %v27_v3  ;;  %s124_s21 = scalar_lea.vmem %s75_s20, 512  ;;  %p129_p9 = scmp.lt.s32.totalorder %s75_s20, %s75_s20 }
  0x17   :  { %92 = vpow2.f32 %v29_v4  ;;  %p125_p8 = scmp.ne.s32.totalorder %s75_s20, %s124_s21  ;;  %p130_p10 = scmp.lt.s32.totalorder %s124_s21, %s124_s21 }
  0x18   :  { %94 = vpow2.f32 %v31_v5 }
  0x19   :  { %96 = vpow2.f32 %v33_v7  ;;  %p131_p11 = por %p130_p10, %p129_p9 }
  0x1b   :  { %p132_p12 = pnand %p131_p11, %p125_p8 }
  0x20   :  { %v91_v8 = vpop.eup %90 }
  0x21   :  { %v93_v9 = vpop.eup %92 }
  0x22   :  { %v95_v10 = vpop.eup %94 }
  0x23   :  { %v97_v11 = vpop.eup %96  ;;  %v43_v12 = vadd.f32 %v95_v10, %v91_v8 }
  0x24   :  { %v50_v13 = vadd.f32 %v97_v11, %v93_v9 }
  0x25   :  { %v44_v14 = vrot.slane %v43_v12, 4 }
  0x26   :  { %v51_v15 = vrot.slane %v50_v13, 4 }
  0x27   :  { %v45_v16 = vadd.f32 %v44_v14, %v43_v12 }
  0x28   :  { %v52_v17 = vadd.f32 %v51_v15, %v50_v13 }
  0x29   :  { %v46_v18 = vrot.slane %v45_v16, 2 }
  0x2a   :  { %v53_v19 = vrot.slane %v52_v17, 2 }
  0x2b   :  { %v47_v20 = vadd.f32 %v46_v18, %v45_v16 }
  0x2c   :  { %v54_v21 = vadd.f32 %v53_v19, %v52_v17 }
  0x2d   :  { %v48_v22 = vrot.slane %v47_v20, 1 }
  0x2e   :  { %v55_v23 = vrot.slane %v54_v21, 1 }
  0x2f   :  { %v49_v24 = vadd.f32 %v48_v22, %v47_v20 }
  0x30   :  { %v56_v25 = vadd.f32 %v55_v23, %v54_v21 }
  0x31   :  { %98 = vrcp.f32 %v49_v24 }
  0x32   :  { %100 = vrcp.f32 %v56_v25 }
  0x3b   :  { %v99_v26 = vpop.eup %98 }
  0x3c   :  { %v101_v27 = vpop.eup %100  ;;  %v61_v28 = vmul.f32 %v99_v26, %v91_v8  ;;  %v63_v29 = vmul.f32 %v99_v26, %v95_v10 }
  0x3d   :  { %v62_v30 = vmul.f32 %v101_v27, %v93_v9  ;;  %v64_v31 = vmul.f32 %v101_v27, %v97_v11 }
  0x3e   :  { %65 = vst [vmem:[#allocation5] sm:$0xff] %v61_v28  ;;  %67 = vst [vmem:[#allocation5 + $0x10] sm:$0xff] %v63_v29 }
  0x3f   :  { %66 = vst [vmem:[#allocation5 + $0x8] sm:$0xff] %v62_v30  ;;  %68 = vst [vmem:[#allocation5 + $0x18] sm:$0xff] %v64_v31 }
  0x40   :  { %135 = shalt.err (!%p132_p12)
}
  0x41   :  { %s136_s24 = scalar_lea.hbm %s195_s1, 512 }
  0x42   :  { %p137_p13 = scmp.ne.s32.totalorder %s195_s1, %s136_s24  ;;  %p140_p0 = scmp.lt.u32.totalorder %s136_s24, %s195_s1 }
  0x44   :  { %p142_p1 = pnand %p140_p0, %p137_p13 }
  0x46   :  { %145 = shalt.err (!%p142_p1)
}
  0x47   :  { %80 = dma.vmem_to_hbm [thread:$0]  %s75_s20, 512, %s195_s1, [#allocation4], %s151_s16, %s151_s16, %s152_s17  }
  0x48   :  { %148 = dma.done.wait [#allocation4], 512  }
  0x49   :  { %149 = vsyncadd [#allocation4], 4294966784 }
  0x4a   :  { %84 = vsyncpa [#allocation3], 1 }
  0x4b   :  { %85 = vsyncpa [#allocation4], 1 }

</bundles_post_ra>
